<compile_context>
chip_gen: v6e
topology: v6e:2x2x1
jax: 0.10.0
libtpu: 0.0.40
codegen_flags: <defaults>
</compile_context>

<pallas_src>
import functools
import math

import jax
import jax.numpy as jnp
from jax import lax
from jax.experimental import pallas as pl
from jax.experimental.pallas import tpu as pltpu


def _alibi_slopes(n_heads):
    # Matches the PyTorch module: x = (2**8)**(1/H); m_i = 1/x**(i+1).
    x = (2.0 ** 8) ** (1.0 / n_heads)
    return [1.0 / (x ** (i + 1)) for i in range(n_heads)]


def _alibi_mha_kernel(x_ref, wqkv_ref, bqkv_ref, wo_ref, bo_ref, bias_ref,
                      o_ref, qkv_ref, ctx_ref, *, n_heads, d_head):
    cd = wqkv_ref.dtype                       # MXU-operand dtype (bf16 or f32)
    D = n_heads * d_head

    x = x_ref[0]                              # (L, D)

    # Fused QKV projection for all heads: one full-width (L,D)@(D,3D) matmul.
    # Wq / bq already carry the 1/sqrt(d_head) scale.
    qkv = jnp.dot(x, wqkv_ref[...], preferred_element_type=jnp.float32)
    qkv_ref[...] = (qkv + bqkv_ref[...]).astype(cd)

    # Static per-head attention (n_heads is a compile-time constant; static
    # slices everywhere -> no dynamic lane offsets).
    for h in range(n_heads):
        lo, hi = h * d_head, (h + 1) * d_head
        q = qkv_ref[:, lo:hi]                 # (L, d_head), already scaled
        k = qkv_ref[:, D + lo:D + hi]
        v = qkv_ref[:, 2 * D + lo:2 * D + hi]

        # Scores: contract the d_head axes directly (q @ k^T).  If the bundle
        # dump ever shows a materialized k transpose, pre-store K transposed.
        s = lax.dot_general(q, k, (((1,), (1,)), ((), ())),
                            preferred_element_type=jnp.float32)   # (L, L)

        # ALiBi: slope*(j-i) == slope*j - slope*i; the per-row term cancels
        # under softmax, so only the (1, L) key-position row is added.
        s = s + bias_ref[h]

        # Numerically stable softmax over keys (f32 throughout).
        m = jnp.max(s, axis=-1, keepdims=True)
        e = jnp.exp(s - m)
        p = e * pl.reciprocal(jnp.sum(e, axis=-1, keepdims=True), approx=True)

        o_h = jnp.dot(p.astype(cd), v, preferred_element_type=jnp.float32)
        ctx_ref[:, lo:hi] = o_h.astype(cd)    # head h's column slice

    # Single full-width output projection over all heads at once.
    out = jnp.dot(ctx_ref[...], wo_ref[...], preferred_element_type=jnp.float32)
    o_ref[0] = (out + bo_ref[...]).astype(o_ref.dtype)


def alibi_mha(x, params, *, n_heads, compute_dtype=jnp.bfloat16):
    B, L, D = x.shape
    assert D % n_heads == 0, "d_model is not divisible by n_heads"
    d_head = D // n_heads
    scale = d_head ** (-0.5)
    cd = jnp.dtype(compute_dtype)

    wq, wk, wv, wo, bq, bk, bv, bo = params

    # PyTorch Linear stores W as (out, in): y = x @ W.T + b.
    # Fused projection matrix (D, 3D): columns are [Q heads | K heads | V heads]
    # in natural head order; the 1/sqrt(d_head) scale is folded into Q.
    wqkv = jnp.concatenate([wq.T * scale, wk.T, wv.T], axis=1).astype(cd)
    bqkv = jnp.concatenate([bq * scale, bk, bv]).reshape(1, 3 * D).astype(jnp.float32)
    wo_m = wo.T.astype(cd)                                     # (D, D)
    bo_r = bo.reshape(1, D).astype(jnp.float32)

    slopes = jnp.asarray(_alibi_slopes(n_heads), jnp.float32)
    # (H, 1, L) rows of slope*j (softmax-shift-invariant form of slope*(j-i)).
    bias_rows = slopes[:, None, None] * jnp.arange(L, dtype=jnp.float32)[None, None, :]

    x_c = x.astype(cd)

    # Raise the scoped-VMEM limit only when the working set needs it.
    cb, xb = cd.itemsize, jnp.dtype(x.dtype).itemsize
    est = (2 * L * D * cb + 2 * L * D * xb          # x / out blocks (double-buffered)
           + 4 * D * D * cb                         # resident Wqkv + Wo
           + 4 * D * 4 + n_heads * L * 4            # biases + ALiBi rows
           + 4 * L * D * cb                         # qkv + ctx scratch
           + 2 * L * L * 4)                         # (L, L) score intermediates
    vmem_limit = None if est <= (32 << 20) else min(int(est * 1.25), 64 << 20)

    kernel = functools.partial(_alibi_mha_kernel, n_heads=n_heads, d_head=d_head)
    const2 = lambda b: (0, 0)

    return pl.pallas_call(
        kernel,
        out_shape=jax.ShapeDtypeStruct((B, L, D), x.dtype),
        grid_spec=pltpu.PrefetchScalarGridSpec(
            num_scalar_prefetch=0,
            grid=(B,),
            in_specs=[
                pl.BlockSpec((1, L, D), lambda b: (b, 0, 0)),        # x
                pl.BlockSpec((D, 3 * D), const2),                    # fused Wqkv
                pl.BlockSpec((1, 3 * D), const2),                    # fused bqkv
                pl.BlockSpec((D, D), const2),                        # Wo
                pl.BlockSpec((1, D), const2),                        # bo
                pl.BlockSpec((n_heads, 1, L), lambda b: (0, 0, 0)),  # ALiBi rows
            ],
            out_specs=pl.BlockSpec((1, L, D), lambda b: (b, 0, 0)),
            scratch_shapes=[pltpu.VMEM((L, 3 * D), cd),              # fused QKV
                            pltpu.VMEM((L, D), cd)],                 # per-head context
        ),
        compiler_params=pltpu.CompilerParams(
            dimension_semantics=("parallel",),
            vmem_limit_bytes=vmem_limit),
    )(x_c, wqkv, bqkv, wo_m, bo_r, bias_rows)


def _reference(x, params, *, n_heads):
    """Plain-JAX reference mirroring the PyTorch forward (is_causal=False)."""
    B, L, D = x.shape
    d_head = D // n_heads
    scale = d_head ** (-0.5)
    wq, wk, wv, wo, bq, bk, bv, bo = params
    slopes = jnp.asarray(_alibi_slopes(n_heads), jnp.float32)[:, None, None]

    def proj(w, b):
        return (x @ w.T + b).reshape(B, L, n_heads, d_head).transpose(0, 2, 1, 3)

    q, k, v = proj(wq, bq), proj(wk, bk), proj(wv, bv)
    rel = (jnp.arange(L)[None, :] - jnp.arange(L)[:, None]).astype(jnp.float32)
    bias = slopes * rel                                        # (H, L, L)
    s = jnp.einsum("bhld,bhmd->bhlm", q, k) * scale + bias[None]
    p = jax.nn.softmax(s, axis=-1)
    o = jnp.einsum("bhlm,bhmd->bhld", p, v)
    o = o.transpose(0, 2, 1, 3).reshape(B, L, D)
    return o @ wo.T + bo


if __name__ == "__main__":
    B, L, D, H = 2, 8, 32, 4
    key = jax.random.PRNGKey(0)
    ks = jax.random.split(key, 9)

    x = jax.random.normal(ks[0], (B, L, D), jnp.float32)
    # Deterministic synthetic parameters (PyTorch Linear convention: W is (out,in)).
    wq = jax.random.normal(ks[1], (D, D), jnp.float32) * (1.0 / math.sqrt(D))
    wk = jax.random.normal(ks[2], (D, D), jnp.float32) * (1.0 / math.sqrt(D))
    wv = jax.random.normal(ks[3], (D, D), jnp.float32) * (1.0 / math.sqrt(D))
    wo = jax.random.normal(ks[4], (D, D), jnp.float32) * (1.0 / math.sqrt(D))
    bq = jax.random.normal(ks[5], (D,), jnp.float32) * 0.02   # qkv_bias=True
    bk = jax.random.normal(ks[6], (D,), jnp.float32) * 0.02
    bv = jax.random.normal(ks[7], (D,), jnp.float32) * 0.02
    bo = jax.random.normal(ks[8], (D,), jnp.float32) * 0.02
    params = (wq, wk, wv, wo, bq, bk, bv, bo)

    out_bf16 = alibi_mha(x, params, n_heads=H)                           # default: bf16 MXU inputs
    out_f32 = alibi_mha(x, params, n_heads=H, compute_dtype=jnp.float32)
    jax.block_until_ready((out_bf16, out_f32))

    ref = _reference(x, params, n_heads=H)
    assert out_bf16.shape == (B, L, D)
    # approx reciprocal (EUP) => slightly relaxed tolerance on the f32 path.
    assert jnp.allclose(out_f32, ref, atol=5e-3, rtol=5e-3), "f32 mismatch vs reference"
    assert jnp.allclose(out_bf16, ref, atol=5e-2, rtol=5e-2), "bf16 mismatch vs reference"
    print("KERNEL_OK")
</pallas_src>

<mosaic_0001>
module attributes {stable_mosaic.version = 11 : i64} {
  func.func @_alibi_mha_kernel(%arg0: i32, %arg1: memref<1x8x32xbf16, #tpu.memory_space<vmem>>, %arg2: memref<32x96xbf16, #tpu.memory_space<vmem>>, %arg3: memref<1x96xf32, #tpu.memory_space<vmem>>, %arg4: memref<32x32xbf16, #tpu.memory_space<vmem>>, %arg5: memref<1x32xf32, #tpu.memory_space<vmem>>, %arg6: memref<4x1x8xf32, #tpu.memory_space<vmem>>, %arg7: memref<1x8x32xf32, #tpu.memory_space<vmem>>, %arg8: memref<8x96xbf16, #tpu.memory_space<vmem>>, %arg9: memref<8x32xbf16, #tpu.memory_space<vmem>>) attributes {dimension_semantics = [#tpu.dimension_semantics<parallel>], iteration_bounds = array<i64: 2>, scalar_prefetch = 0 : i64, scratch_operands = 2 : i64, tpu.core_type = #tpu.core_type<tc>, window_params = [{transform_indices = @transform_0, window_bounds = array<i64: 1, 8, 32>}, {pipeline_mode = #tpu.pipeline_mode<synchronous>, transform_indices = @transform_1, window_bounds = array<i64: 32, 96>}, {pipeline_mode = #tpu.pipeline_mode<synchronous>, transform_indices = @transform_2, window_bounds = array<i64: 1, 96>}, {pipeline_mode = #tpu.pipeline_mode<synchronous>, transform_indices = @transform_3, window_bounds = array<i64: 32, 32>}, {pipeline_mode = #tpu.pipeline_mode<synchronous>, transform_indices = @transform_4, window_bounds = array<i64: 1, 32>}, {pipeline_mode = #tpu.pipeline_mode<synchronous>, transform_indices = @transform_5, window_bounds = array<i64: 4, 1, 8>}, {transform_indices = @transform_6, window_bounds = array<i64: 1, 8, 32>}]} {
    %c0 = arith.constant 0 : index
    %c0_0 = arith.constant 0 : index
    %c0_1 = arith.constant 0 : index
    %0 = vector.load %arg1[%c0, %c0_0, %c0_1] : memref<1x8x32xbf16, #tpu.memory_space<vmem>>, vector<1x8x32xbf16>
    %1 = vector.shape_cast %0 : vector<1x8x32xbf16> to vector<8x32xbf16>
    %c0_2 = arith.constant 0 : index
    %c0_3 = arith.constant 0 : index
    %2 = vector.load %arg2[%c0_2, %c0_3] : memref<32x96xbf16, #tpu.memory_space<vmem>>, vector<32x96xbf16>
    %cst = arith.constant dense<0.000000e+00> : vector<8x96xf32>
    %3 = tpu.matmul %1, %2, %cst {dimension_numbers = #tpu.dot_dimension_numbers<[1], [0], [0], [1], [0, 0, 1, 1], [], []>} : vector<8x32xbf16>, vector<32x96xbf16>, vector<8x96xf32> -> vector<8x96xf32>
    %c0_4 = arith.constant 0 : index
    %c0_5 = arith.constant 0 : index
    %4 = vector.load %arg3[%c0_4, %c0_5] : memref<1x96xf32, #tpu.memory_space<vmem>>, vector<1x96xf32>
    %5 = vector.broadcast %4 : vector<1x96xf32> to vector<8x96xf32>
    %6 = arith.addf %3, %5 : vector<8x96xf32>
    %7 = arith.truncf %6 : vector<8x96xf32> to vector<8x96xbf16>
    %c0_6 = arith.constant 0 : index
    %c0_7 = arith.constant 0 : index
    %8 = vector.load %arg8[%c0_6, %c0_7] : memref<8x96xbf16, #tpu.memory_space<vmem>>, vector<8x96xbf16>
    tpu.vector_store %arg8[%c0_6, %c0_7], %7 {strides = array<i32>} : memref<8x96xbf16, #tpu.memory_space<vmem>>, vector<8x96xbf16>,
    %c0_8 = arith.constant 0 : index
    %c0_9 = arith.constant 0 : index
    %9 = vector.load %arg8[%c0_8, %c0_9] : memref<8x96xbf16, #tpu.memory_space<vmem>>, vector<8x8xbf16>
    %c0_10 = arith.constant 0 : index
    %c32 = arith.constant 32 : index
    %10 = vector.load %arg8[%c0_10, %c32] : memref<8x96xbf16, #tpu.memory_space<vmem>>, vector<8x8xbf16>
    %c0_11 = arith.constant 0 : index
    %c64 = arith.constant 64 : index
    %11 = vector.load %arg8[%c0_11, %c64] : memref<8x96xbf16, #tpu.memory_space<vmem>>, vector<8x8xbf16>
    %cst_12 = arith.constant dense<0.000000e+00> : vector<8x8xf32>
    %12 = tpu.matmul %9, %10, %cst_12 {dimension_numbers = #tpu.dot_dimension_numbers<[1], [1], [0], [0], [0, 0, 1, 0], [], []>} : vector<8x8xbf16>, vector<8x8xbf16>, vector<8x8xf32> -> vector<8x8xf32>
    %c0_13 = arith.constant 0 : index
    %c0_14 = arith.constant 0 : index
    %c0_15 = arith.constant 0 : index
    %13 = vector.load %arg6[%c0_13, %c0_14, %c0_15] : memref<4x1x8xf32, #tpu.memory_space<vmem>>, vector<1x1x8xf32>
    %14 = vector.shape_cast %13 : vector<1x1x8xf32> to vector<1x8xf32>
    %15 = vector.broadcast %14 : vector<1x8xf32> to vector<8x8xf32>
    %16 = arith.addf %12, %15 : vector<8x8xf32>
    %cst_16 = arith.constant dense<0xFF800000> : vector<8xf32>
    %17 = vector.multi_reduction <maximumf>, %16, %cst_16 [1] : vector<8x8xf32> to vector<8xf32>
    %18 = vector.shape_cast %17 : vector<8xf32> to vector<8x1xf32>
    %19 = vector.broadcast %18 : vector<8x1xf32> to vector<8x8xf32>
    %20 = arith.subf %16, %19 : vector<8x8xf32>
    %21 = math.exp %20 : vector<8x8xf32>
    %cst_17 = arith.constant dense<0.000000e+00> : vector<8xf32>
    %22 = vector.multi_reduction <add>, %21, %cst_17 [1] : vector<8x8xf32> to vector<8xf32>
    %23 = vector.shape_cast %22 : vector<8xf32> to vector<8x1xf32>
    %24 = tpu.reciprocal %23 {approx = true} : vector<8x1xf32> -> vector<8x1xf32>
    %25 = vector.broadcast %24 : vector<8x1xf32> to vector<8x8xf32>
    %26 = arith.mulf %21, %25 : vector<8x8xf32>
    %27 = arith.truncf %26 : vector<8x8xf32> to vector<8x8xbf16>
    %cst_18 = arith.constant dense<0.000000e+00> : vector<8x8xf32>
    %28 = tpu.matmul %27, %11, %cst_18 {dimension_numbers = #tpu.dot_dimension_numbers<[1], [0], [0], [1], [0, 0, 1, 1], [], []>} : vector<8x8xbf16>, vector<8x8xbf16>, vector<8x8xf32> -> vector<8x8xf32>
    %29 = arith.truncf %28 : vector<8x8xf32> to vector<8x8xbf16>
    %c0_19 = arith.constant 0 : index
    %c0_20 = arith.constant 0 : index
    %30 = vector.load %arg9[%c0_19, %c0_20] : memref<8x32xbf16, #tpu.memory_space<vmem>>, vector<8x8xbf16>
    tpu.vector_store %arg9[%c0_19, %c0_20], %29 {strides = array<i32>} : memref<8x32xbf16, #tpu.memory_space<vmem>>, vector<8x8xbf16>,
    %c0_21 = arith.constant 0 : index
    %c8 = arith.constant 8 : index
    %31 = vector.load %arg8[%c0_21, %c8] : memref<8x96xbf16, #tpu.memory_space<vmem>>, vector<8x8xbf16>
    %c0_22 = arith.constant 0 : index
    %c40 = arith.constant 40 : index
    %32 = vector.load %arg8[%c0_22, %c40] : memref<8x96xbf16, #tpu.memory_space<vmem>>, vector<8x8xbf16>
    %c0_23 = arith.constant 0 : index
    %c72 = arith.constant 72 : index
    %33 = vector.load %arg8[%c0_23, %c72] : memref<8x96xbf16, #tpu.memory_space<vmem>>, vector<8x8xbf16>
    %cst_24 = arith.constant dense<0.000000e+00> : vector<8x8xf32>
    %34 = tpu.matmul %31, %32, %cst_24 {dimension_numbers = #tpu.dot_dimension_numbers<[1], [1], [0], [0], [0, 0, 1, 0], [], []>} : vector<8x8xbf16>, vector<8x8xbf16>, vector<8x8xf32> -> vector<8x8xf32>
    %c1 = arith.constant 1 : index
    %c0_25 = arith.constant 0 : index
    %c0_26 = arith.constant 0 : index
    %35 = vector.load %arg6[%c1, %c0_25, %c0_26] : memref<4x1x8xf32, #tpu.memory_space<vmem>>, vector<1x1x8xf32>
    %36 = vector.shape_cast %35 : vector<1x1x8xf32> to vector<1x8xf32>
    %37 = vector.broadcast %36 : vector<1x8xf32> to vector<8x8xf32>
    %38 = arith.addf %34, %37 : vector<8x8xf32>
    %cst_27 = arith.constant dense<0xFF800000> : vector<8xf32>
    %39 = vector.multi_reduction <maximumf>, %38, %cst_27 [1] : vector<8x8xf32> to vector<8xf32>
    %40 = vector.shape_cast %39 : vector<8xf32> to vector<8x1xf32>
    %41 = vector.broadcast %40 : vector<8x1xf32> to vector<8x8xf32>
    %42 = arith.subf %38, %41 : vector<8x8xf32>
    %43 = math.exp %42 : vector<8x8xf32>
    %cst_28 = arith.constant dense<0.000000e+00> : vector<8xf32>
    %44 = vector.multi_reduction <add>, %43, %cst_28 [1] : vector<8x8xf32> to vector<8xf32>
    %45 = vector.shape_cast %44 : vector<8xf32> to vector<8x1xf32>
    %46 = tpu.reciprocal %45 {approx = true} : vector<8x1xf32> -> vector<8x1xf32>
    %47 = vector.broadcast %46 : vector<8x1xf32> to vector<8x8xf32>
    %48 = arith.mulf %43, %47 : vector<8x8xf32>
    %49 = arith.truncf %48 : vector<8x8xf32> to vector<8x8xbf16>
    %cst_29 = arith.constant dense<0.000000e+00> : vector<8x8xf32>
    %50 = tpu.matmul %49, %33, %cst_29 {dimension_numbers = #tpu.dot_dimension_numbers<[1], [0], [0], [1], [0, 0, 1, 1], [], []>} : vector<8x8xbf16>, vector<8x8xbf16>, vector<8x8xf32> -> vector<8x8xf32>
    %51 = arith.truncf %50 : vector<8x8xf32> to vector<8x8xbf16>
    %c0_30 = arith.constant 0 : index
    %c8_31 = arith.constant 8 : index
    %52 = vector.load %arg9[%c0_30, %c8_31] : memref<8x32xbf16, #tpu.memory_space<vmem>>, vector<8x8xbf16>
    tpu.vector_store %arg9[%c0_30, %c8_31], %51 {strides = array<i32>} : memref<8x32xbf16, #tpu.memory_space<vmem>>, vector<8x8xbf16>,
    %c0_32 = arith.constant 0 : index
    %c16 = arith.constant 16 : index
    %53 = vector.load %arg8[%c0_32, %c16] : memref<8x96xbf16, #tpu.memory_space<vmem>>, vector<8x8xbf16>
    %c0_33 = arith.constant 0 : index
    %c48 = arith.constant 48 : index
    %54 = vector.load %arg8[%c0_33, %c48] : memref<8x96xbf16, #tpu.memory_space<vmem>>, vector<8x8xbf16>
    %c0_34 = arith.constant 0 : index
    %c80 = arith.constant 80 : index
    %55 = vector.load %arg8[%c0_34, %c80] : memref<8x96xbf16, #tpu.memory_space<vmem>>, vector<8x8xbf16>
    %cst_35 = arith.constant dense<0.000000e+00> : vector<8x8xf32>
    %56 = tpu.matmul %53, %54, %cst_35 {dimension_numbers = #tpu.dot_dimension_numbers<[1], [1], [0], [0], [0, 0, 1, 0], [], []>} : vector<8x8xbf16>, vector<8x8xbf16>, vector<8x8xf32> -> vector<8x8xf32>
    %c2 = arith.constant 2 : index
    %c0_36 = arith.constant 0 : index
    %c0_37 = arith.constant 0 : index
    %57 = vector.load %arg6[%c2, %c0_36, %c0_37] : memref<4x1x8xf32, #tpu.memory_space<vmem>>, vector<1x1x8xf32>
    %58 = vector.shape_cast %57 : vector<1x1x8xf32> to vector<1x8xf32>
    %59 = vector.broadcast %58 : vector<1x8xf32> to vector<8x8xf32>
    %60 = arith.addf %56, %59 : vector<8x8xf32>
    %cst_38 = arith.constant dense<0xFF800000> : vector<8xf32>
    %61 = vector.multi_reduction <maximumf>, %60, %cst_38 [1] : vector<8x8xf32> to vector<8xf32>
    %62 = vector.shape_cast %61 : vector<8xf32> to vector<8x1xf32>
    %63 = vector.broadcast %62 : vector<8x1xf32> to vector<8x8xf32>
    %64 = arith.subf %60, %63 : vector<8x8xf32>
    %65 = math.exp %64 : vector<8x8xf32>
    %cst_39 = arith.constant dense<0.000000e+00> : vector<8xf32>
    %66 = vector.multi_reduction <add>, %65, %cst_39 [1] : vector<8x8xf32> to vector<8xf32>
    %67 = vector.shape_cast %66 : vector<8xf32> to vector<8x1xf32>
    %68 = tpu.reciprocal %67 {approx = true} : vector<8x1xf32> -> vector<8x1xf32>
    %69 = vector.broadcast %68 : vector<8x1xf32> to vector<8x8xf32>
    %70 = arith.mulf %65, %69 : vector<8x8xf32>
    %71 = arith.truncf %70 : vector<8x8xf32> to vector<8x8xbf16>
    %cst_40 = arith.constant dense<0.000000e+00> : vector<8x8xf32>
    %72 = tpu.matmul %71, %55, %cst_40 {dimension_numbers = #tpu.dot_dimension_numbers<[1], [0], [0], [1], [0, 0, 1, 1], [], []>} : vector<8x8xbf16>, vector<8x8xbf16>, vector<8x8xf32> -> vector<8x8xf32>
    %73 = arith.truncf %72 : vector<8x8xf32> to vector<8x8xbf16>
    %c0_41 = arith.constant 0 : index
    %c16_42 = arith.constant 16 : index
    %74 = vector.load %arg9[%c0_41, %c16_42] : memref<8x32xbf16, #tpu.memory_space<vmem>>, vector<8x8xbf16>
    tpu.vector_store %arg9[%c0_41, %c16_42], %73 {strides = array<i32>} : memref<8x32xbf16, #tpu.memory_space<vmem>>, vector<8x8xbf16>,
    %c0_43 = arith.constant 0 : index
    %c24 = arith.constant 24 : index
    %75 = vector.load %arg8[%c0_43, %c24] : memref<8x96xbf16, #tpu.memory_space<vmem>>, vector<8x8xbf16>
    %c0_44 = arith.constant 0 : index
    %c56 = arith.constant 56 : index
    %76 = vector.load %arg8[%c0_44, %c56] : memref<8x96xbf16, #tpu.memory_space<vmem>>, vector<8x8xbf16>
    %c0_45 = arith.constant 0 : index
    %c88 = arith.constant 88 : index
    %77 = vector.load %arg8[%c0_45, %c88] : memref<8x96xbf16, #tpu.memory_space<vmem>>, vector<8x8xbf16>
    %cst_46 = arith.constant dense<0.000000e+00> : vector<8x8xf32>
    %78 = tpu.matmul %75, %76, %cst_46 {dimension_numbers = #tpu.dot_dimension_numbers<[1], [1], [0], [0], [0, 0, 1, 0], [], []>} : vector<8x8xbf16>, vector<8x8xbf16>, vector<8x8xf32> -> vector<8x8xf32>
    %c3 = arith.constant 3 : index
    %c0_47 = arith.constant 0 : index
    %c0_48 = arith.constant 0 : index
    %79 = vector.load %arg6[%c3, %c0_47, %c0_48] : memref<4x1x8xf32, #tpu.memory_space<vmem>>, vector<1x1x8xf32>
    %80 = vector.shape_cast %79 : vector<1x1x8xf32> to vector<1x8xf32>
    %81 = vector.broadcast %80 : vector<1x8xf32> to vector<8x8xf32>
    %82 = arith.addf %78, %81 : vector<8x8xf32>
    %cst_49 = arith.constant dense<0xFF800000> : vector<8xf32>
    %83 = vector.multi_reduction <maximumf>, %82, %cst_49 [1] : vector<8x8xf32> to vector<8xf32>
    %84 = vector.shape_cast %83 : vector<8xf32> to vector<8x1xf32>
    %85 = vector.broadcast %84 : vector<8x1xf32> to vector<8x8xf32>
    %86 = arith.subf %82, %85 : vector<8x8xf32>
    %87 = math.exp %86 : vector<8x8xf32>
    %cst_50 = arith.constant dense<0.000000e+00> : vector<8xf32>
    %88 = vector.multi_reduction <add>, %87, %cst_50 [1] : vector<8x8xf32> to vector<8xf32>
    %89 = vector.shape_cast %88 : vector<8xf32> to vector<8x1xf32>
    %90 = tpu.reciprocal %89 {approx = true} : vector<8x1xf32> -> vector<8x1xf32>
    %91 = vector.broadcast %90 : vector<8x1xf32> to vector<8x8xf32>
    %92 = arith.mulf %87, %91 : vector<8x8xf32>
    %93 = arith.truncf %92 : vector<8x8xf32> to vector<8x8xbf16>
    %cst_51 = arith.constant dense<0.000000e+00> : vector<8x8xf32>
    %94 = tpu.matmul %93, %77, %cst_51 {dimension_numbers = #tpu.dot_dimension_numbers<[1], [0], [0], [1], [0, 0, 1, 1], [], []>} : vector<8x8xbf16>, vector<8x8xbf16>, vector<8x8xf32> -> vector<8x8xf32>
    %95 = arith.truncf %94 : vector<8x8xf32> to vector<8x8xbf16>
    %c0_52 = arith.constant 0 : index
    %c24_53 = arith.constant 24 : index
    %96 = vector.load %arg9[%c0_52, %c24_53] : memref<8x32xbf16, #tpu.memory_space<vmem>>, vector<8x8xbf16>
    tpu.vector_store %arg9[%c0_52, %c24_53], %95 {strides = array<i32>} : memref<8x32xbf16, #tpu.memory_space<vmem>>, vector<8x8xbf16>,
    %c0_54 = arith.constant 0 : index
    %c0_55 = arith.constant 0 : index
    %97 = vector.load %arg9[%c0_54, %c0_55] : memref<8x32xbf16, #tpu.memory_space<vmem>>, vector<8x32xbf16>
    %c0_56 = arith.constant 0 : index
    %c0_57 = arith.constant 0 : index
    %98 = vector.load %arg4[%c0_56, %c0_57] : memref<32x32xbf16, #tpu.memory_space<vmem>>, vector<32x32xbf16>
    %cst_58 = arith.constant dense<0.000000e+00> : vector<8x32xf32>
    %99 = tpu.matmul %97, %98, %cst_58 {dimension_numbers = #tpu.dot_dimension_numbers<[1], [0], [0], [1], [0, 0, 1, 1], [], []>} : vector<8x32xbf16>, vector<32x32xbf16>, vector<8x32xf32> -> vector<8x32xf32>
    %c0_59 = arith.constant 0 : index
    %c0_60 = arith.constant 0 : index
    %100 = vector.load %arg5[%c0_59, %c0_60] : memref<1x32xf32, #tpu.memory_space<vmem>>, vector<1x32xf32>
    %101 = vector.broadcast %100 : vector<1x32xf32> to vector<8x32xf32>
    %102 = arith.addf %99, %101 : vector<8x32xf32>
    %c0_61 = arith.constant 0 : index
    %c0_62 = arith.constant 0 : index
    %c0_63 = arith.constant 0 : index
    %103 = vector.load %arg7[%c0_61, %c0_62, %c0_63] : memref<1x8x32xf32, #tpu.memory_space<vmem>>, vector<1x8x32xf32>
    %104 = vector.shape_cast %103 : vector<1x8x32xf32> to vector<8x32xf32>
    %105 = vector.shape_cast %102 : vector<8x32xf32> to vector<1x8x32xf32>
    tpu.vector_store %arg7[%c0_61, %c0_62, %c0_63], %105 {strides = array<i32>} : memref<1x8x32xf32, #tpu.memory_space<vmem>>, vector<1x8x32xf32>,
    return
  }
  func.func @transform_0(%arg0: i32) -> (i32, i32, i32) {
    %c0_i32 = arith.constant 0 : i32
    %c0_i32_0 = arith.constant 0 : i32
    %c0_i32_1 = arith.constant 0 : i32
    return %arg0, %c0_i32, %c0_i32_0 : i32, i32, i32
  }
  func.func @transform_1(%arg0: i32) -> (i32, i32) {
    %c0_i32 = arith.constant 0 : i32
    %c0_i32_0 = arith.constant 0 : i32
    %c0_i32_1 = arith.constant 0 : i32
    return %c0_i32, %c0_i32_0 : i32, i32
  }
  func.func @transform_2(%arg0: i32) -> (i32, i32) {
    %c0_i32 = arith.constant 0 : i32
    %c0_i32_0 = arith.constant 0 : i32
    %c0_i32_1 = arith.constant 0 : i32
    return %c0_i32, %c0_i32_0 : i32, i32
  }
  func.func @transform_3(%arg0: i32) -> (i32, i32) {
    %c0_i32 = arith.constant 0 : i32
    %c0_i32_0 = arith.constant 0 : i32
    %c0_i32_1 = arith.constant 0 : i32
    return %c0_i32, %c0_i32_0 : i32, i32
  }
  func.func @transform_4(%arg0: i32) -> (i32, i32) {
    %c0_i32 = arith.constant 0 : i32
    %c0_i32_0 = arith.constant 0 : i32
    %c0_i32_1 = arith.constant 0 : i32
    return %c0_i32, %c0_i32_0 : i32, i32
  }
  func.func @transform_5(%arg0: i32) -> (i32, i32, i32) {
    %c0_i32 = arith.constant 0 : i32
    %c0_i32_0 = arith.constant 0 : i32
    %c0_i32_1 = arith.constant 0 : i32
    %c0_i32_2 = arith.constant 0 : i32
    return %c0_i32, %c0_i32_0, %c0_i32_1 : i32, i32, i32
  }
  func.func @transform_6(%arg0: i32) -> (i32, i32, i32) {
    %c0_i32 = arith.constant 0 : i32
    %c0_i32_0 = arith.constant 0 : i32
    %c0_i32_1 = arith.constant 0 : i32
    return %arg0, %c0_i32, %c0_i32_0 : i32, i32, i32
  }
}

</mosaic_0001>

<bundles_post_ra>
// kernel: tpu_custom_call.1
= control target key start
LH: loop header
LB: loop body
LE: loop exit
PB: predicated region body
PF: predicated region fallthrough
CT: control target
= control target key end

     0   :  { %s1781_s0 = inlined_call_operand.hbm [shape: bf16[2,8,32], index: 0, kind: input, shape index: {}]   ;;  %s1782_s1 = inlined_call_operand.hbm [shape: bf16[32,96], index: 1, kind: input, shape index: {}]   ;;  %s1783_s2 = inlined_call_operand.vmem [shape: f32[1,96], index: 2, kind: input, shape index: {}]   ;;  %s1784_s3 = inlined_call_operand.hbm [shape: bf16[32,32], index: 3, kind: input, shape index: {}]   ;;  %s1785_s4 = inlined_call_operand.vmem [shape: f32[1,32], index: 4, kind: input, shape index: {}]   ;;  %s1786_s5 = inlined_call_operand.vmem [shape: f32[4,1,8], index: 5, kind: input, shape index: {}]   ;;  %s1787_s6 = inlined_call_operand.hbm [shape: f32[2,8,32], index: 6, kind: output, shape index: {}]  }
   0x1   :  { %1792 = sst [smem:[#allocation14_spill]] %s1782_s1 }
   0x2   :  { %11 = vsyncpa [#allocation5], 0 }
   0x3   :  { %13 = vsyncpa [#allocation5 + $0x1], 0 }
   0x4   :  { %14 = vsyncpa [#allocation8], 0 }
   0x5   :  { %15 = vsyncpa [#allocation6], 0 }
   0x6   :  { %17 = vsyncpa [#allocation6 + $0x1], 0  ;;  %s1507_s21 = smov 0   ;;  %s1509_s22 = smov 0  }
   0x7   :  { %s1511_s23 = smov 0   ;;  %s1513_s24 = smov 0  }
   0x8 LB: > { %s1528_s25 = sadd.s32 4294967295, %s1448_s24   ;;  %s1056_s26 = sadd.s32 4294967294, %s1448_s24   ;;  %s1448_s24 = sphi %s1513_s24, %s1811_s24   ;;  %s1444_s23 = sphi %s1511_s23, %s1810_s23   ;;  %s1440_s22 = sphi %s1509_s22, %s1809_s22   ;;  %s1436_s21 = sphi %s1507_s21, %s1808_s21  }
   0x9   : > { %p43_p0 = scmp.ne.s32.totalorder %s1440_s22, %s1436_s21  ;;  %p1788_p1 = scmp.eq.s32.totalorder %s1528_s25, 0 }
   0xa   : > { %p178_p3 = scmp.eq.s32.totalorder %s1056_s26, 1  ;;  %p1057_p5 = scmp.ge.s32.totalorder %s1448_s24, 1 }
   0xb   : > { %p1537_p4 = por %p1788_p1, %p43_p0  ;;  %p185_p7 = scmp.lt.s32.totalorder %s1448_s24, 3 }
   0xc   : > { %p1542_p6 = por %p178_p3, %p43_p0  ;;  %s1450_s30 = smov [#allocation7]  }
   0xd   : > { %s1793_s27 = scalar_select %p1537_p4, 1, 0 }
   0xe   : > { %s1794_s28 = scalar_select %p1542_p6, 1, 0 }
   0xf   : > { %p1547_p8 = pnand %p1057_p5, %p185_p7  ;;  %s197_s7 = sshll.u32 %s1450_s30, 4  ;;  %s198_s7 = int_to_ptr.vmem [resolvable:$true] %s197_s7 }
  0x10   : > { %s1451_s9 = smov [#allocation9]   ;;  %s1311_s11 = scalar_lea.vmem %s198_s7, 256 }
  0x11   : > { %s1795_s29 = scalar_select %p1547_p8, 1, 0 }
  0x12   : > { %p1203_p9 = pneg %p1547_p8  ;;  %s213_s10 = sshll.u32 %s1451_s9, 4  ;;  %s214_s10 = int_to_ptr.vmem [resolvable:$true] %s213_s10 }
  0x13   : > { %p1312_p13 = scmp.ne.s32.totalorder %s198_s7, %s1311_s11  ;;  %p1319_p5 = scmp.lt.s32.totalorder %s198_s7, %s198_s7 }
  0x14   : > { %p1556_p11 = pnand %p1203_p9, %p1788_p1  ;;  %p1320_p7 = scmp.lt.s32.totalorder %s1311_s11, %s1311_s11 }
  0x16   : > { %p1302_p12 = pneg %p1556_p11  ;;  %p1321_p10 = por %p1320_p7, %p1319_p5 }
  0x18   : > { %p1314_p0 = pnand %p1312_p13, %p1302_p12 }
  0x1a   : > { %p1315_p3 = pneg %p1314_p0 }
  0x1c   : > { %p1322_p9 = pnand %p1321_p10, %p1315_p3 }
  0x1e   : > { %1325 = shalt.err (!%p1322_p9)
}
  0x1f   : > { %s1452_s12 = smov 64   ;;  %s1453_s13 = smov 4  }
  0x20   : > { %s1797_s1 = sld [smem:[#allocation14_spill]]  ;;  %s1337_s16 = scalar_lea.vmem %s214_s10, 256 }
  0x21   : > { %p1338_p1 = scmp.ne.s32.totalorder %s214_s10, %s1337_s16  ;;  %p1345_p2 = scmp.lt.s32.totalorder %s214_s10, %s214_s10 }
  0x22   : > { %p1346_p6 = scmp.lt.s32.totalorder %s1337_s16, %s1337_s16 }
  0x23   : > { %p1340_p13 = pnand %p1338_p1, %p1302_p12 }
  0x24   : > { %p1347_p5 = por %p1346_p6, %p1345_p2 }
  0x25   : > { %p1341_p0 = pneg %p1340_p13 }
  0x26   : > { %1206 = dma.hbm_to_vmem [thread:$0]  (!%p1556_p11), %s1797_s1, 256, %s198_s7, [#allocation8], %s1452_s12, %s1452_s12, %s1453_s13  }
  0x27   : > { %p1348_p10 = pnand %p1347_p5, %p1341_p0 }
  0x29   : > { %1351 = shalt.err (!%p1348_p10)
}
  0x2a   : > { %1209 = dma.hbm_to_vmem [thread:$0]  (!%p1556_p11), %s1784_s3, 256, %s214_s10, [#allocation8], %s1452_s12, %s1452_s12, %s1453_s13  }
  0x2b   : > { %s1579_s19 = sadd.s32 1, %s1448_s24   ;;  %s30_s20 = sadd.s32 1, %s1444_s23 }
  0x2c   : > { %s27_s26 = ssub.s32 %s1448_s24, %s1579_s19  ;;  %p37_p1 = scmp.ne.s32.totalorder %s1444_s23, %s1440_s22 }
  0x2d   : > { %p28_p2 = scmp.eq.s32.totalorder %s27_s26, 0  ;;  %p38_p6 = scmp.eq.s32.totalorder %s1448_s24, 0 }
  0x2e   : > { %p1798_p12 = scmp.eq.s32.totalorder %s1528_s25, 1  ;;  %p1220_p7 = scmp.lt.s32.totalorder %s1448_s24, 2 }
  0x2f   : > { %s1595_s7 = scalar_select %p28_p2, %s1444_s23, %s30_s20  }
  0x30   : > { %p1589_p3 = por %p1798_p12, %p37_p1  ;;  %p39_p9 = por %p38_p6, %p37_p1 }
  0x31   : > { %s233_s8 = sand.u32 1, %s1444_s23   ;;  %s1062_s10 = sshll.u32 %s1448_s24, 6 }
  0x32   : > { %s1799_s30 = scalar_select %p1589_p3, 1, 0 }
  0x33   : > { %s1061_s9 = sshll.u32 %s233_s8, 2  ;;  %s1602_s13 = scalar_lea.hbm %s1781_s0, %s1062_s10 }
  0x34   : > { %s237_s14 = scalar_lea.vmem [#allocation4], %s1061_s9  ;;  %p1604_p11 = pnand %p1220_p7, %p39_p9 }
  0x35   : > { %s244_s15 = sshll.u32 %s237_s14, 4  ;;  %s234_s17 = scalar_lea.sflag [#allocation5], %s233_s8  ;;  %s245_s15 = int_to_ptr.vmem [resolvable:$true] %s244_s15 }
  0x36   : > { %s1352_s18 = scalar_lea.hbm %s1602_s13, 64  ;;  %p1354_p0 = pneg %p1604_p11 }
  0x37   : > { %p1353_p13 = scmp.ne.s32.totalorder %s1602_s13, %s1352_s18  ;;  %s1357_s10 = scalar_lea.hbm %s1781_s0, 128 }
  0x38   : > { %p1358_p1 = scmp.lt.s32.totalorder %s1602_s13, %s1781_s0  ;;  %p1359_p2 = scmp.lt.s32.totalorder %s1357_s10, %s1352_s18 }
  0x39   : > { %p1355_p5 = pnand %p1354_p0, %p1353_p13 }
  0x3a   : > { %p1360_p6 = por %p1359_p2, %p1358_p1 }
  0x3b   : > { %p1356_p10 = pneg %p1355_p5 }
  0x3d   : > { %p1361_p12 = pnand %p1360_p6, %p1356_p10 }
  0x3f   : > { %1364 = shalt.err (!%p1361_p12)
}
  0x40   : > { %s1365_s12 = scalar_lea.vmem %s245_s15, 64  ;;  %s1454_s8 = smov [#allocation4]  }
  0x41   : > { %p1366_p7 = scmp.ne.s32.totalorder %s245_s15, %s1365_s12  ;;  %s1370_s14 = sshll.u32 %s1454_s8, 4  ;;  %s1371_s14 = int_to_ptr.vmem [resolvable:$false] %s1370_s14 }
  0x42   : > { %s1372_s1 = scalar_lea.vmem %s1371_s14, 128  ;;  %p1373_p13 = scmp.lt.s32.totalorder %s245_s15, %s1371_s14 }
  0x43   : > { %p1368_p9 = pnand %p1366_p7, %p1354_p0  ;;  %p1374_p5 = scmp.lt.s32.totalorder %s1372_s1, %s1365_s12 }
  0x45   : > { %p1369_p3 = pneg %p1368_p9  ;;  %p1375_p4 = por %p1374_p5, %p1373_p13 }
  0x47   : > { %p1376_p8 = pnand %p1375_p4, %p1369_p3 }
  0x49   : > { %1379 = shalt.err (!%p1376_p8)
}
  0x4a   : > { %1213 = dma.hbm_to_vmem [thread:$0]  (!%p1604_p11), %s1602_s13, 64, %s245_s15, %s234_s17  }
  0x4b   : > { %p1801_p10 = scmp.ne.s32.totalorder %s1795_s29, 0 }
  0x4c   : > { %s1625_s18 = sand.u32 (!%p1801_p10), 1, %s1440_s22   ;;  %p1802_p0 = scmp.ne.s32.totalorder (!%p1801_p10), %s1793_s27, 0 }
  0x4d   : > { %253 = sbr.rel (%p1801_p10) target bundleno = 1524 (0x5f4), region = 44  ;;  %s1064_s20 = sshll.u32 (!%p1801_p10), %s1625_s18, 2 }
  0x4e   : > { %s256_s26 = scalar_lea.sflag (!%p1801_p10), [#allocation5], %s1625_s18  ;;  %s259_s10 = scalar_lea.vmem (!%p1801_p10), [#allocation4], %s1064_s20 }
  0x52   : > { %1423 = dma.done.wait (%p1802_p0), %s256_s26, 64  }
  0x53   : > { %1425 = vsyncadd (%p1802_p0), %s256_s26, 4294967232  ;;  %p1803_p4 = scmp.eq.s32.totalorder %s1528_s25, 0 }
  0x55   : > { %1427 = dma.done.wait (%p1803_p4), [#allocation8], 512   ;;  %p1804_p8 = pmov %p1803_p4 }
  0x56   : > { %v1455_v0 = vmov 0.0   ;;  %vm1456_vm0 = vmmov 0   ;;  %v1276_v1 = vld [vmem:[#allocation7 + $0x8] sm:$0xff]   ;;  %v1277_v2 = vld [vmem:[#allocation7] sm:$0xff]   ;;  %v297_v3 = vld [vmem:[%s259_s10] sm:$0xf] }
  0x57   : > { %1429 = vsyncadd (%p1804_p8), [#allocation8], 4294966784  ;;  %1127 = vmatprep.subr.bf16.mxu0 %v1455_v0  ;;  %1131 = vmatprep.mubr.msk.bf16.mxu0 %vm1456_vm0, %v1455_v0  ;;  %vm321_vm1 = vcmask 261120   ;;  %v1068_v4 = vld [vmem:[%s1783_s2] ss:$0 sm:$0xff]  ;;  %vm366_vm2 = vcmask 781312  }
  0x58   : > { %1135 = vmatprep.subr.bf16.mxu1 %v1455_v0  ;;  %1137 = vmatprep.mubr.msk.bf16.mxu1 %vm1456_vm0, %v1455_v0  ;;  %s1457_s29 = smov 120   ;;  %s1458_s13 = smov 96   ;;  %vm381_vm3 = vcmask 64512   ;;  %v1072_v27 = vld [vmem:[%s1786_s5] ss:$0 sm:$0xff]  ;;  %vm445_vm4 = vcmask 1043456  }
  0x59   : > { %1128 = vmatpush3.bf16.msra.mxu0 %v1276_v1  ;;  %s1459_s15 = smov 80   ;;  %s1460_s16 = smov 88   ;;  %v1077_v34 = vld [vmem:[%s1786_s5 + $0x1] ss:$0 sm:$0xff]  ;;  %v1083_v41 = vld [vmem:[%s1786_s5 + $0x2] ss:$0 sm:$0xff] }
  0x5a   : > { %1129 = vmatprep.subr.bf16.mxu0 %v1455_v0  ;;  %s1461_s17 = smov 72   ;;  %s1462_s11 = smov 112   ;;  %v1089_v48 = vld [vmem:[%s1786_s5 + $0x3] ss:$0 sm:$0xff]  ;;  %vm490_vm5 = vcmask 60416   ;;  %vm621_vm6 = vcmask 126016  }
  0x5b   : > { %s1463_s9 = smov 104   ;;  %vm752_vm7 = vcmask 191616   ;;  %vm883_vm8 = vcmask 257216   ;;  %s1067_s12 = sshll.u32 %s1625_s18, 3 }
  0x5c   : > { %s1099_s20 = sshll.u32 %s1528_s25, 7  ;;  %s295_s26 = scalar_lea.vmem [#allocation10], %s1067_s12 }
  0x5d   : > { %1130 = vmatpush3.bf16.msra.mxu0 %v1277_v2  ;;  %s967_s10 = sshll.u32 %s295_s26, 4  ;;  %p1805_p11 = scmp.ne.s32.totalorder %s1799_s30, 0  ;;  %s1739_s10 = int_to_ptr.vmem [resolvable:$true] %s967_s10 }
  0x5e   : > { %1141 = vmatprep.subr.bf16.mxu0 %v1455_v0  ;;  %s1380_s25 = scalar_lea.vmem %s1739_s10, 128 }
  0x5f   : > { %p1381_p3 = scmp.ne.s32.totalorder %s1739_s10, %s1380_s25 }
  0x60   : > { %1132 = vmatmul.mubr.msk.bf16.vlgmr.msra.gmra.mxu0 %vm321_vm1, %v297_v3 }
  0x61   : > { %1143 = vmatprep.mubr.msk.bf16.mxu0 %vm1456_vm0, %v1455_v0  ;;  %p1382_p1 = pnand %p1381_p3, %p1805_p11 }
  0x63   : > { %p1383_p2 = pneg %p1382_p1 }
 0x120   : > { %v359_v5 = vpop.f32.mrf.mxu0 }
 0x121   : > { %v360_v6 = vadd.f32 %v1068_v4, %v359_v5 }
 0x122   : > { %v1133_v7 = vpop.f32.mrf.mxu0 }
 0x123   : > { %v365_v8 = vpack.c.bf16 %v360_v6, %v360_v6 }
 0x124   : > { %v362_v9 = vpop.f32.mrf.mxu0 }
 0x125   : > { %367 = vst.msk [vmem:[#allocation2] sm:$0xf] %vm366_vm2, %v365_v8 }
 0x126   : > { %v1134_v10 = vpop.f32.mrf.mxu0 }
 0x12c   : > { %v1651_v11 = vld [vmem:[#allocation2] ss:$0 sps:$4 sm:$0xff]  }
 0x12d   : > { %v368_v12 = vld [vmem:[#allocation2] sm:$0xf]  ;;  %504 = vrot.lane.b32.xlu1 %v1651_v11, %s1457_s29  ;;  %s1464_s29 = smov 56  }
 0x12e   : > { %v1653_v13 = vcombine.low %v368_v12, %v368_v12  ;;  %v1657_v14 = vld [vmem:[#allocation2] ss:$0 sps:$4 sm:$0xff]  }
 0x12f   : > { %v1661_v15 = vld [vmem:[#allocation2] ss:$0 sps:$4 sm:$0xff]  }
 0x130   : > { %379 = vrot.lane.b32.xlu0 %v1653_v13, %s1458_s13  ;;  %s1465_s13 = smov 64  }
 0x131   : > { %637 = vrot.lane.b32.xlu1 %v1657_v14, %s1459_s15  ;;  %s1466_s15 = smov 40  }
 0x134   : > { %506 = vrot.lane.b32.xlu0 %v1651_v11, %s1460_s16  ;;  %s1467_s16 = smov 48  }
 0x135   : > { %768 = vrot.lane.b32.xlu1 %v1661_v15, %s1461_s17  ;;  %s1468_s17 = smov 8  }
 0x138   : > { %635 = vrot.lane.b32.xlu0 %v1657_v14, %s1462_s11  ;;  %s1469_s11 = smov 16  }
 0x13c   : > { %766 = vrot.lane.b32.xlu0 %v1661_v15, %s1463_s9  ;;  %s1470_s9 = smov 24  }
 0x19f   : > { %v505_v19 = vpop.permute.xlu1 %504 }
 0x1a2   : > { %v380_v16 = vpop.permute.xlu0 %379 }
 0x1a3   : > { %v386_v17 = vsel %vm381_vm3, %v380_v16, 0  ;;  %v638_v21 = vpop.permute.xlu1 %637 }
 0x1a4   : > { %1136 = vmatpush3.bf16.xpose.msra.mxu1 %v386_v17  ;;  %v643_v22 = vsel %vm381_vm3, %v638_v21, 0 }
 0x1a5   : > { %1147 = vmatprep.subr.bf16.mxu1 %v1455_v0 }
 0x1a6   : > { %v507_v18 = vpop.permute.xlu0 %506 }
 0x1a7   : > { %v512_v20 = vsel %vm381_vm3, %v507_v18, 0  ;;  %v769_v23 = vpop.permute.xlu1 %768 }
 0x1a8   : > { %v774_v25 = vsel %vm381_vm3, %v769_v23, 0 }
 0x1aa   : > { %v636_v24 = vpop.permute.xlu0 %635 }
 0x1ab   : > { %1138 = vmatmul.mubr.msk.bf16.vlgmr.msra.gmra.mxu1 %vm381_vm3, %v368_v12 }
 0x1ac   : > { %1148 = vmatpush3.bf16.xpose.msra.mxu1 %v512_v20  ;;  %1149 = vmatprep.mubr.msk.bf16.mxu1 %vm1456_vm0, %v1455_v0 }
 0x1ad   : > { %1159 = vmatprep.subr.bf16.mxu1 %v1455_v0 }
 0x1ae   : > { %v767_v26 = vpop.permute.xlu0 %766 }
 0x1b3   : > { %1150 = vmatmul.mubr.msk.bf16.vlgmr.msra.gmra.mxu1 %vm381_vm3, %v505_v19 }
 0x1b4   : > { %1160 = vmatpush3.bf16.xpose.msra.mxu1 %v643_v22  ;;  %1161 = vmatprep.mubr.msk.bf16.mxu1 %vm1456_vm0, %v1455_v0 }
 0x1b5   : > { %1171 = vmatprep.subr.bf16.mxu1 %v1455_v0 }
 0x1bb   : > { %1162 = vmatmul.mubr.msk.bf16.vlgmr.msra.gmra.mxu1 %vm381_vm3, %v636_v24 }
 0x1bc   : > { %1172 = vmatpush3.bf16.xpose.msra.mxu1 %v774_v25  ;;  %1173 = vmatprep.mubr.msk.bf16.mxu1 %vm1456_vm0, %v1455_v0 }
 0x1bd   : > { %1183 = vmatprep.subr.bf16.mxu1 %v1455_v0 }
 0x1c3   : > { %1174 = vmatmul.mubr.msk.bf16.vlgmr.msra.gmra.mxu1 %vm381_vm3, %v767_v26 }
 0x1c4   : > { %1187 = vmatprep.mubr.msk.bf16.mxu1 %vm1456_vm0, %v1455_v0 }
 0x26b   : > { %v422_v28 = vpop.f32.mrf.mxu1 }
 0x26c   : > { %v423_v29 = vadd.f32 %v1072_v27, %v422_v28 }
 0x26d   : > { %v1139_v30 = vpop.f32.mrf.mxu1 }
 0x26e   : > { %v428_v31 = vsel %vm381_vm3, %v423_v29, -inf }
 0x26f   : > { %429 = vmax.xlane.f32.xlu1 %v428_v31  ;;  %v425_v32 = vpop.f32.mrf.mxu1 }
 0x271   : > { %v1140_v33 = vpop.f32.mrf.mxu1 }
 0x273   : > { %v548_v35 = vpop.f32.mrf.mxu1 }
 0x274   : > { %v549_v36 = vadd.f32 %v1077_v34, %v548_v35 }
 0x275   : > { %v1151_v37 = vpop.f32.mrf.mxu1 }
 0x276   : > { %v554_v38 = vsel %vm381_vm3, %v549_v36, -inf }
 0x277   : > { %555 = vmax.xlane.f32.xlu0 %v554_v38  ;;  %v551_v39 = vpop.f32.mrf.mxu1 }
 0x279   : > { %v1152_v40 = vpop.f32.mrf.mxu1 }
 0x27b   : > { %v679_v42 = vpop.f32.mrf.mxu1 }
 0x27c   : > { %v680_v43 = vadd.f32 %v1083_v41, %v679_v42 }
 0x27d   : > { %v1163_v44 = vpop.f32.mrf.mxu1 }
 0x27e   : > { %v685_v45 = vsel %vm381_vm3, %v680_v43, -inf }
 0x27f   : > { %686 = vmax.xlane.f32.xlu0 %v685_v45  ;;  %v682_v46 = vpop.f32.mrf.mxu1 }
 0x281   : > { %v1164_v47 = vpop.f32.mrf.mxu1 }
 0x282   : > { %v1282_v47 = vld [vmem:[#allocation9 + $0x8] sm:$0xff]  }
 0x283   : > { %v810_v49 = vpop.f32.mrf.mxu1  ;;  %1184 = vmatpush3.bf16.msra.mxu1 %v1282_v47 }
 0x284   : > { %v811_v50 = vadd.f32 %v1089_v48, %v810_v49  ;;  %1185 = vmatprep.subr.bf16.mxu1 %v1455_v0 }
 0x285   : > { %v1175_v51 = vpop.f32.mrf.mxu1 }
 0x286   : > { %v816_v52 = vsel %vm381_vm3, %v811_v50, -inf }
 0x287   : > { %817 = vmax.xlane.f32.xlu1 %v816_v52  ;;  %v813_v53 = vpop.f32.mrf.mxu1 }
 0x289   : > { %v1176_v54 = vpop.f32.mrf.mxu1 }
 0x2f8   : > { %v430_v55 = vpop.xlane.xlu1 %429 }
 0x2f9   : > { %v431_v56 = vsub.f32 %v423_v29, %v430_v55 }
 0x2fb   : > { %v432_v57 = vmul.f32 1.442695, %v431_v56 }
 0x2fd   : > { %1284 = vpow2.f32 %v432_v57 }
 0x300   : > { %v556_v58 = vpop.xlane.xlu0 %555 }
 0x301   : > { %v557_v59 = vsub.f32 %v549_v36, %v556_v58 }
 0x303   : > { %v558_v60 = vmul.f32 1.442695, %v557_v59 }
 0x305   : > { %1286 = vpow2.f32 %v558_v60 }
 0x308   : > { %v687_v61 = vpop.xlane.xlu0 %686 }
 0x309   : > { %v688_v62 = vsub.f32 %v680_v43, %v687_v61  ;;  %v1094_v61 = vld [vmem:[%s1785_s4] ss:$0 sm:$0xff] }
 0x30a   : > { %v1285_v63 = vpop.eup %1284 }
 0x30b   : > { %v689_v1 = vmul.f32 1.442695, %v688_v62  ;;  %v434_v2 = vsel %vm381_vm3, %v1285_v63, 0.0 }
 0x30c   : > { %435 = vadd.xlane.f32.xlu0 %v434_v2 }
 0x30d   : > { %1288 = vpow2.f32 %v689_v1 }
 0x310   : > { %v818_v7 = vpop.xlane.xlu1 %817 }
 0x311   : > { %v819_v8 = vsub.f32 %v811_v50, %v818_v7  ;;  %v1283_v50 = vld [vmem:[#allocation9] sm:$0xff]  }
 0x312   : > { %v1287_v3 = vpop.eup %1286  ;;  %1186 = vmatpush3.bf16.msra.mxu1 %v1283_v50 }
 0x313   : > { %v560_v4 = vsel %vm381_vm3, %v1287_v3, 0.0  ;;  %v820_v9 = vmul.f32 1.442695, %v819_v8 }
 0x314   : > { %561 = vadd.xlane.f32.xlu1 %v560_v4 }
 0x315   : > { %1290 = vpow2.f32 %v820_v9 }
 0x31a   : > { %v1289_v5 = vpop.eup %1288 }
 0x31b   : > { %v691_v6 = vsel %vm381_vm3, %v1289_v5, 0.0 }
 0x31c   : > { %692 = vadd.xlane.f32.xlu0 %v691_v6 }
 0x322   : > { %v1291_v10 = vpop.eup %1290 }
 0x323   : > { %v822_v12 = vsel %vm381_vm3, %v1291_v10, 0.0 }
 0x325   : > { %566 = vrot.lane.b32.xlu1 %v1651_v11, %s1464_s29  ;;  %s1737_s29 = scalar_lea.hbm %s1787_s6, %s1099_s20 }
 0x332   : > { %440 = vrot.lane.b32.xlu0 %v1653_v13, %s1465_s13  ;;  %s954_s13 = scalar_lea.sflag [#allocation6], %s1625_s18 }
 0x336   : > { %828 = vrot.lane.b32.xlu0 %v1661_v15, %s1466_s15  ;;  %s1471_s15 = smov [#allocation10]  }
 0x349   : > { %823 = vadd.xlane.f32.xlu1 %v822_v12 }
 0x35a   : > { %697 = vrot.lane.b32.xlu1 %v1657_v14, %s1467_s16  ;;  %s1384_s16 = sshll.u32 %s1471_s15, 4  ;;  %s1385_s16 = int_to_ptr.vmem [resolvable:$false] %s1384_s16 }
 0x35b   : > { %p1387_p6 = scmp.lt.s32.totalorder %s1739_s10, %s1385_s16 }
 0x395   : > { %v436_v16 = vpop.xlane.xlu0 %435 }
 0x396   : > { %1292 = vrcp.f32 %v436_v16 }
 0x39d   : > { %v562_v11 = vpop.xlane.xlu1 %561 }
 0x39e   : > { %1294 = vrcp.f32 %v562_v11 }
 0x3a1   : > { %v567_v15 = vpop.permute.xlu1 %566 }
 0x3a2   : > { %v572_v23 = vsel %vm445_vm4, %v567_v15, 0 }
 0x3a3   : > { %v1293_v17 = vpop.eup %1292 }
 0x3a4   : > { %v438_v19 = vmul.f32 %v1293_v17, %v1285_v63 }
 0x3a5   : > { %v693_v18 = vpop.xlane.xlu0 %692 }
 0x3a6   : > { %v439_v21 = vpack.c.bf16 %v438_v19, %v438_v19  ;;  %1296 = vrcp.f32 %v693_v18 }
 0x3a9   : > { %v441_v13 = vpop.permute.xlu0 %440 }
 0x3aa   : > { %v447_v20 = vsel %vm445_vm4, %v441_v13, 0 }
 0x3ab   : > { %1142 = vmatpush3.bf16.msra.mxu0 %v447_v20  ;;  %v1295_v22 = vpop.eup %1294 }
 0x3ac   : > { %1153 = vmatprep.subr.bf16.mxu0 %v1455_v0  ;;  %v564_v14 = vmul.f32 %v1295_v22, %v1287_v3 }
 0x3ad   : > { %v829_v30 = vpop.permute.xlu0 %828 }
 0x3ae   : > { %1144 = vmatmul.mubr.msk.bf16.vlgmr.msra.gmra.mxu0 %vm381_vm3, %v439_v21  ;;  %v565_v24 = vpack.c.bf16 %v564_v14, %v564_v14  ;;  %v834_v32 = vsel %vm445_vm4, %v829_v30, 0 }
 0x3af   : > { %1154 = vmatpush3.bf16.msra.mxu0 %v572_v23  ;;  %1155 = vmatprep.mubr.msk.bf16.mxu0 %vm1456_vm0, %v1455_v0 }
 0x3b0   : > { %1165 = vmatprep.subr.bf16.mxu0 %v1455_v0 }
 0x3b3   : > { %v1297_v25 = vpop.eup %1296 }
 0x3b4   : > { %v695_v27 = vmul.f32 %v1297_v25, %v1289_v5 }
 0x3b6   : > { %1156 = vmatmul.mubr.msk.bf16.vlgmr.msra.gmra.mxu0 %vm381_vm3, %v565_v24  ;;  %v696_v31 = vpack.c.bf16 %v695_v27, %v695_v27 }
 0x3b7   : > { %1167 = vmatprep.mubr.msk.bf16.mxu0 %vm1456_vm0, %v1455_v0 }
 0x3d2   : > { %v824_v26 = vpop.xlane.xlu1 %823 }
 0x3d3   : > { %1298 = vrcp.f32 %v824_v26 }
 0x3d6   : > { %v698_v28 = vpop.permute.xlu1 %697 }
 0x3d7   : > { %v703_v29 = vsel %vm445_vm4, %v698_v28, 0 }
 0x3d8   : > { %1166 = vmatpush3.bf16.msra.mxu0 %v703_v29 }
 0x3d9   : > { %1177 = vmatprep.subr.bf16.mxu0 %v1455_v0 }
 0x3db   : > { %1168 = vmatmul.mubr.msk.bf16.vlgmr.msra.gmra.mxu0 %vm381_vm3, %v696_v31 }
 0x3dc   : > { %1178 = vmatpush3.bf16.msra.mxu0 %v834_v32  ;;  %1179 = vmatprep.mubr.msk.bf16.mxu0 %vm1456_vm0, %v1455_v0 }
 0x3e0   : > { %v1299_v33 = vpop.eup %1298 }
 0x3e1   : > { %v826_v34 = vmul.f32 %v1299_v33, %v1291_v10 }
 0x3e3   : > { %v827_v35 = vpack.c.bf16 %v826_v34, %v826_v34 }
 0x3e5   : > { %1180 = vmatmul.mubr.msk.bf16.vlgmr.msra.gmra.mxu0 %vm381_vm3, %v827_v35 }
 0x46e   : > { %v483_v36 = vpop.f32.mrf.mxu0 }
 0x46f   : > { %v489_v37 = vpack.c.bf16 %v483_v36, %v483_v36 }
 0x470   : > { %v1145_v38 = vpop.f32.mrf.mxu0 }
 0x471   : > { %491 = vst.msk [vmem:[#allocation3] sm:$0xf] %vm490_vm5, %v489_v37 }
 0x472   : > { %v486_v39 = vpop.f32.mrf.mxu0 }
 0x474   : > { %v1146_v40 = vpop.f32.mrf.mxu0 }
 0x476   : > { %v608_v41 = vpop.f32.mrf.mxu0 }
 0x477   : > { %v1102_v42 = vpack.c.bf16 %v608_v41, %v608_v41 }
 0x478   : > { %v1157_v43 = vpop.f32.mrf.mxu0 }
 0x479   : > { %618 = vrot.lane.b32.xlu1 %v1102_v42, %s1468_s17  ;;  %s1386_s17 = scalar_lea.vmem %s1385_s16, 256 }
 0x47a   : > { %v611_v44 = vpop.f32.mrf.mxu0  ;;  %p1388_p12 = scmp.lt.s32.totalorder %s1386_s17, %s1380_s25 }
 0x47c   : > { %v1158_v45 = vpop.f32.mrf.mxu0  ;;  %p1389_p7 = por %p1388_p12, %p1387_p6 }
 0x47e   : > { %p1390_p9 = pnand %p1389_p7, %p1383_p2 }
 0x49b   : > { %v739_v46 = vpop.f32.mrf.mxu0 }
 0x49c   : > { %v1103_v48 = vpack.c.bf16 %v739_v46, %v739_v46 }
 0x49d   : > { %v1169_v49 = vpop.f32.mrf.mxu0 }
 0x49e   : > { %749 = vrot.lane.b32.xlu0 %v1103_v48, %s1469_s11 }
 0x49f   : > { %v742_v51 = vpop.f32.mrf.mxu0 }
 0x4a1   : > { %v1170_v52 = vpop.f32.mrf.mxu0 }
 0x4a5   : > { %v870_v53 = vpop.f32.mrf.mxu0 }
 0x4a6   : > { %v1104_v54 = vpack.c.bf16 %v870_v53, %v870_v53 }
 0x4a7   : > { %v1181_v55 = vpop.f32.mrf.mxu0 }
 0x4a8   : > { %880 = vrot.lane.b32.xlu1 %v1104_v54, %s1470_s9 }
 0x4a9   : > { %v873_v56 = vpop.f32.mrf.mxu0 }
 0x4ab   : > { %v1182_v57 = vpop.f32.mrf.mxu0 }
 0x4eb   : > { %v619_v58 = vpop.permute.xlu1 %618 }
 0x4ec   : > { %622 = vst.msk [vmem:[#allocation3] sm:$0xf] %vm621_vm6, %v619_v58 }
 0x510   : > { %v750_v59 = vpop.permute.xlu0 %749 }
 0x511   : > { %753 = vst.msk [vmem:[#allocation3] sm:$0xf] %vm752_vm7, %v750_v59 }
 0x51a   : > { %v881_v0 = vpop.permute.xlu1 %880 }
 0x51b   : > { %884 = vst.msk [vmem:[#allocation3] sm:$0xf] %vm883_vm8, %v881_v0 }
 0x522   : > { %v885_v60 = vld [vmem:[#allocation3] sm:$0xf] }
 0x523   : > { %1188 = vmatmul.mubr.msk.bf16.vlgmr.msra.gmra.mxu1 %vm321_vm1, %v885_v60 }
 0x5e3   : > { %v946_v62 = vpop.f32.mrf.mxu1 }
 0x5e4   : > { %v947_v63 = vadd.f32 %v1094_v61, %v946_v62 }
 0x5e5   : > { %v1189_v1 = vpop.f32.mrf.mxu1 }
 0x5e6   : > { %952 = vst.msk [vmem:[%s295_s26] sm:$0xff] %vm321_vm1, %v947_v63 }
 0x5e7   : > { %v949_v2 = vpop.f32.mrf.mxu1 }
 0x5e8   : > { %1393 = shalt.err (!%p1390_p9)
}
 0x5e9   : > { %s1394_s11 = scalar_lea.hbm %s1737_s29, 128  ;;  %s1398_s12 = scalar_lea.hbm %s1787_s6, 256 }
 0x5ea   : > { %p1395_p13 = scmp.ne.s32.totalorder %s1737_s29, %s1394_s11  ;;  %p1399_p0 = scmp.lt.s32.totalorder %s1737_s29, %s1787_s6 }
 0x5eb   : > { %p1400_p4 = scmp.lt.s32.totalorder %s1398_s12, %s1394_s11 }
 0x5ec   : > { %p1396_p5 = pnand %p1395_p13, %p1805_p11 }
 0x5ed   : > { %p1401_p8 = por %p1400_p4, %p1399_p0 }
 0x5ee   : > { %p1397_p10 = pneg %p1396_p5 }
 0x5f0   : > { %p1402_p3 = pnand %p1401_p8, %p1397_p10 }
 0x5f2   : > { %1405 = shalt.err (!%p1402_p3)
}
 0x5f3   : > { %1201 = dma.vmem_to_hbm [thread:$0]  (%p1805_p11), %s1739_s10, 128, %s1737_s29, %s954_s13   ;;  %v1190_v3 = vpop.f32.mrf.mxu1 }
 0x5f4 PF: > { %s979_s20 = sand.u32 1, %s1436_s21   ;;  %p1806_p1 = scmp.ne.s32.totalorder %s1794_s28, 0 }
 0x5f5   : > { %p1807_p2 = scmp.ge.s32.totalorder %s1448_s24, 2  ;;  %s980_s26 = scalar_lea.sflag [#allocation6], %s979_s20 }
 0x5f7   : > { %p1215_p6 = pnand %p1807_p2, %p1806_p1 }
 0x5f9   : > { %p1216_p12 = pneg %p1215_p6 }
 0x5fb   : > { %1431 = dma.done.wait (%p1216_p12), %s980_s26, 128  }
 0x5fc   : > { %1433 = vsyncadd (%p1216_p12), %s980_s26, 4294967168  ;;  %p20_p7 = scmp.ge.s32.totalorder %s1579_s19, 4   ;;  %s1808_s21 = smov %s1440_s22 }
 0x5fd   : > { %s1809_s22 = smov %s1444_s23  ;;  %s1810_s23 = smov %s1595_s7 }
 0x5fe   : > { %s1811_s24 = smov %s1579_s19  ;;  %22 = sbr.rel (!%p20_p7) target bundleno = 8 (0x8), region = 100 }
 0x603   :  { %985 = vsyncpa [#allocation5], 1 }
 0x604   :  { %987 = vsyncpa [#allocation5 + $0x1], 1 }
 0x605   :  { %988 = vsyncpa [#allocation8], 1 }
 0x606   :  { %989 = vsyncpa [#allocation6], 1 }
 0x607   :  { %991 = vsyncpa [#allocation6 + $0x1], 1 }

</bundles_post_ra>
